<compile_context>
chip_gen: v7x
topology: tpu7x:2x2x1
jax: 0.10.0
libtpu: 0.0.40
codegen_flags: <defaults>
</compile_context>

<pallas_src>
import functools

import jax
import jax.numpy as jnp
from jax import lax
from jax.experimental import pallas as pl
from jax.experimental.pallas import tpu as pltpu


# ---------------------------------------------------------------------------
# VMEM-aware sizing helpers
# ---------------------------------------------------------------------------

def _vmem_capacity_bytes():
    try:
        return int(pltpu.get_tpu_info().vmem_capacity_bytes)
    except Exception:
        return 64 << 20                      # v7x per-TC capacity = safest lower bound


def _block_budget_bytes(itemsize):
    cap = _vmem_capacity_bytes()
    budget = min(4 << 20, cap // 16)         # ~4 MiB blocks (also 4 MiB on v7x's 64 MiB)
    if itemsize < 4:
        budget //= 2                         # keep the f32 temps comparable for bf16 in
    return max(budget, 1 << 20)


def _vmem_limit_bytes():
    # 2 in + 2 out double-buffered blocks + ~3x f32 temps per in-flight step fit easily
    # under 3/4 of physical VMEM on every generation (v7x: 48 MiB, v5e/v6e: 96 MiB).
    cap = _vmem_capacity_bytes()
    return int(min(cap * 3 // 4, 96 << 20))


# ---------------------------------------------------------------------------
# Kernels
# ---------------------------------------------------------------------------

def _inv_pow(t, beta):
    # t ** (-beta) for the strictly positive LRN divisor, kept on the EUP.
    # NOTE: like the PyTorch module, t <= 0 (e.g. k <= 0) would produce NaN/inf.
    if beta == 0.75:
        r = lax.rsqrt(t)
        return r * jnp.sqrt(r)               # t^-0.5 * t^-0.25 = t^-0.75
    if beta == 0.5:
        return lax.rsqrt(t)
    if beta == 1.0:
        return 1.0 / t
    if beta == 0.0:
        return jnp.ones_like(t)
    return jnp.exp(jnp.float32(-beta) * jnp.log(t))


def _lrn_pointwise_kernel(x_ref, o_ref, *, alpha, beta, k):
    # local_size == 1 fast path: purely elementwise on a flat lane-dense 2-D view.
    x = x_ref[...].astype(jnp.float32)
    sq = x * x
    if alpha == 1.0:
        t = sq + jnp.float32(k)
    else:
        t = jnp.float32(alpha) * sq + jnp.float32(k)
    o_ref[...] = (x * _inv_pow(t, beta)).astype(o_ref.dtype)


def _lrn_band_kernel(band_ref, x_ref, o_ref, *, beta, k):
    # local_size > 1: cross-channel window sum as one batched banded matmul on the MXU
    # (full channel axis resident, so no halo).  The band already carries the
    # alpha / local_size scale, so no per-element rescale is needed here.
    x = x_ref[...].astype(jnp.float32)                      # (B, C, T)
    sq = x * x
    acc = jnp.einsum("bdc,bct->bdt", band_ref[...], sq,
                     preferred_element_type=jnp.float32)    # (B, C, T)
    t = acc + jnp.float32(k)
    o_ref[...] = (x * _inv_pow(t, beta)).astype(o_ref.dtype)


# ---------------------------------------------------------------------------
# Wrappers
# ---------------------------------------------------------------------------

def _lrn_pointwise(x, *, alpha, beta, k):
    orig_shape = x.shape
    itemsize = jnp.dtype(x.dtype).itemsize
    total = int(x.size)
    budget = _block_budget_bytes(itemsize)

    lane = 1024 if total >= 8 * 1024 else 128               # lane-dense width (mult of 128)
    rows = pl.cdiv(total, lane)
    br = max(8, (budget // (lane * itemsize)) // 8 * 8)     # rows per block (mult of 8)
    br = min(br, ((rows + 7) // 8) * 8)
    if rows >= 16:                                          # keep >= 2 grid steps (v7x 2 TCs)
        br = min(br, (((rows + 1) // 2 + 7) // 8) * 8)
    rows_pad = pl.cdiv(rows, br) * br

    flat = x.reshape(-1)
    pad = rows_pad * lane - total
    if pad:
        flat = jnp.pad(flat, (0, pad))
    x2 = flat.reshape(rows_pad, lane)

    kernel = functools.partial(_lrn_pointwise_kernel,
                               alpha=float(alpha), beta=float(beta), k=float(k))
    out2 = pl.pallas_call(
        kernel,
        out_shape=jax.ShapeDtypeStruct((rows_pad, lane), x.dtype),
        grid_spec=pltpu.PrefetchScalarGridSpec(
            num_scalar_prefetch=0,
            grid=(rows_pad // br,),
            in_specs=[pl.BlockSpec((br, lane), lambda i: (i, 0))],
            out_specs=pl.BlockSpec((br, lane), lambda i: (i, 0)),
        ),
        compiler_params=pltpu.CompilerParams(
            dimension_semantics=("parallel",),
            vmem_limit_bytes=_vmem_limit_bytes(),
        ),
    )(x2)
    return out2.reshape(-1)[:total].reshape(orig_shape)


def _lrn_across_channels(x, *, local_size, alpha, beta, k):
    N, C, H, W = x.shape
    itemsize = jnp.dtype(x.dtype).itemsize
    HW = H * W
    HW_pad = pl.cdiv(HW, 128) * 128                         # lane-dense last dim
    budget = _block_budget_bytes(itemsize)

    x3 = x.reshape(N, C, HW)
    if HW_pad != HW:
        x3 = jnp.pad(x3, ((0, 0), (0, 0), (0, HW_pad - HW)))

    per_image = C * HW_pad * itemsize
    if per_image <= budget:
        # Contiguous full-(C, HW) slab per image; only then pack images per block.
        tile_hw = HW_pad
        b_tile = 1
        for b in range(1, N + 1):
            if N % b:
                continue
            if b * per_image > budget:
                break
            if N >= 2 and N // b < 2:                       # keep >= 2 batch steps (v7x)
                continue
            b_tile = b
    else:
        b_tile = 1
        tile_hw = 128
        cand = 256
        while cand <= HW_pad:
            if HW_pad % cand == 0 and C * cand * itemsize <= budget:
                tile_hw = cand
            cand += 128

    # Banded window matrix (output channel i sums input channels [i-pad, i+pad], zero
    # padded, count_include_pad) with alpha / local_size folded into the band values.
    # Built once in the wrapper and kept grid-resident in VMEM.
    # TODO(synk): for v5e with large C, a bf16 band (or a pltpu.roll shift-add) keeps the
    # window sum off the slow f32 MXU path; kept f32 here for exactness.
    pad_lo = (local_size - 1) // 2
    ci = jnp.arange(C, dtype=jnp.int32)[:, None]            # output channel
    cj = jnp.arange(C, dtype=jnp.int32)[None, :]            # input channel
    band = (cj >= ci - pad_lo) & (cj <= ci - pad_lo + (local_size - 1))
    band = band.astype(jnp.float32) * jnp.float32(alpha / local_size)
    band_b = jnp.broadcast_to(band, (b_tile, C, C))

    grid = (N // b_tile, HW_pad // tile_hw)
    kernel = functools.partial(_lrn_band_kernel, beta=float(beta), k=float(k))

    out3 = pl.pallas_call(
        kernel,
        out_shape=jax.ShapeDtypeStruct((N, C, HW_pad), x.dtype),
        grid_spec=pltpu.PrefetchScalarGridSpec(
            num_scalar_prefetch=0,
            grid=grid,
            in_specs=[
                pl.BlockSpec((b_tile, C, C), lambda n, s: (0, 0, 0)),        # band, resident
                pl.BlockSpec((b_tile, C, tile_hw), lambda n, s: (n, 0, s)),  # x
            ],
            out_specs=pl.BlockSpec((b_tile, C, tile_hw), lambda n, s: (n, 0, s)),
        ),
        compiler_params=pltpu.CompilerParams(
            dimension_semantics=("parallel", "parallel"),
            vmem_limit_bytes=_vmem_limit_bytes(),
        ),
    )(band_b, x3)

    if HW_pad != HW:
        out3 = out3[:, :, :HW]
    return out3.reshape(N, C, H, W)


def spatial_cross_map_lrn(x, *, local_size=1, alpha=1.0, beta=0.75, k=1.0):
    """Forward of SpatialCrossMapLRN (ACROSS_CHANNELS=True). x: (N, C, H, W) NCHW."""
    local_size = int(local_size)
    assert local_size >= 1 and local_size % 2 == 1, (
        "PyTorch AvgPool3d padding reproduces LRN only for odd local_size")
    # TODO(synk): ACROSS_CHANNELS=False (2-D spatial AvgPool) path not implemented.

    if local_size == 1:
        return _lrn_pointwise(x, alpha=alpha, beta=beta, k=k)
    return _lrn_across_channels(x, local_size=local_size, alpha=alpha, beta=beta, k=k)


# ---------------------------------------------------------------------------
# Pure-JAX reference (mirrors the PyTorch forward, across-channels path)
# ---------------------------------------------------------------------------

def _lrn_reference(x, *, local_size=1, alpha=1.0, beta=0.75, k=1.0):
    N, C, H, W = x.shape
    sq = x.astype(jnp.float32) ** 2
    pad = (local_size - 1) // 2
    pad_hi = local_size - 1 - pad
    padded = jnp.pad(sq, ((0, 0), (pad, pad_hi), (0, 0), (0, 0)))
    acc = jnp.zeros_like(sq)
    for d in range(local_size):
        acc = acc + padded[:, d:d + C]
    avg = acc / float(local_size)
    div = jnp.power(alpha * avg + k, beta)
    return (x.astype(jnp.float32) / div).astype(x.dtype)


if __name__ == "__main__":
    key = jax.random.PRNGKey(0)
    x = jax.random.normal(key, (2, 4, 16, 16), dtype=jnp.float32)

    # Module defaults: local_size=1, alpha=1.0, beta=0.75, k=1  -> elementwise fast path.
    out = jax.block_until_ready(spatial_cross_map_lrn(x))
    ref = _lrn_reference(x)
    assert out.shape == x.shape and out.dtype == x.dtype
    assert jnp.allclose(out, ref, atol=2e-5, rtol=2e-5), "local_size=1 mismatch"

    # Cross-channel window path (banded MXU matmul, beta=0.75 rsqrt path).
    out3 = jax.block_until_ready(
        spatial_cross_map_lrn(x, local_size=3, alpha=1e-4, beta=0.75, k=2.0))
    ref3 = _lrn_reference(x, local_size=3, alpha=1e-4, beta=0.75, k=2.0)
    assert jnp.allclose(out3, ref3, atol=2e-5, rtol=2e-5), "local_size=3 mismatch"

    # General-beta fallback path (exp(-beta * log t)).
    out5 = jax.block_until_ready(
        spatial_cross_map_lrn(x, local_size=5, alpha=2e-4, beta=0.6, k=1.5))
    ref5 = _lrn_reference(x, local_size=5, alpha=2e-4, beta=0.6, k=1.5)
    assert jnp.allclose(out5, ref5, atol=2e-5, rtol=2e-5), "local_size=5 mismatch"

    # Non-128-aligned spatial extent -> wrapper-side lane padding path.
    xr = jax.random.normal(jax.random.PRNGKey(0), (2, 4, 15, 15), dtype=jnp.float32)
    outr = jax.block_until_ready(
        spatial_cross_map_lrn(xr, local_size=3, alpha=1e-4, beta=0.75, k=2.0))
    refr = _lrn_reference(xr, local_size=3, alpha=1e-4, beta=0.75, k=2.0)
    assert outr.shape == xr.shape
    assert jnp.allclose(outr, refr, atol=2e-5, rtol=2e-5), "padded-HW mismatch"

    print("KERNEL_OK")
</pallas_src>

<mosaic_0001>
module attributes {stable_mosaic.version = 11 : i64} {
  func.func @_lrn_pointwise_kernel(%arg0: i32, %arg1: memref<8x128xf32, #tpu.memory_space<vmem>>, %arg2: memref<8x128xf32, #tpu.memory_space<vmem>>) attributes {dimension_semantics = [#tpu.dimension_semantics<parallel>], iteration_bounds = array<i64: 2>, scalar_prefetch = 0 : i64, scratch_operands = 0 : i64, tpu.core_type = #tpu.core_type<tc>, window_params = [{transform_indices = @transform_0, window_bounds = array<i64: 8, 128>}, {transform_indices = @transform_1, window_bounds = array<i64: 8, 128>}]} {
    %c0 = arith.constant 0 : index
    %c0_0 = arith.constant 0 : index
    %0 = vector.load %arg1[%c0, %c0_0] : memref<8x128xf32, #tpu.memory_space<vmem>>, vector<8x128xf32>
    %1 = arith.mulf %0, %0 : vector<8x128xf32>
    %cst = arith.constant 1.000000e+00 : f32
    %2 = vector.broadcast %cst : f32 to vector<8x128xf32>
    %3 = arith.addf %1, %2 : vector<8x128xf32>
    %4 = math.rsqrt %3 : vector<8x128xf32>
    %5 = math.sqrt %4 : vector<8x128xf32>
    %6 = arith.mulf %4, %5 : vector<8x128xf32>
    %7 = arith.mulf %0, %6 : vector<8x128xf32>
    %c0_1 = arith.constant 0 : index
    %c0_2 = arith.constant 0 : index
    %8 = vector.load %arg2[%c0_1, %c0_2] : memref<8x128xf32, #tpu.memory_space<vmem>>, vector<8x128xf32>
    tpu.vector_store %arg2[%c0_1, %c0_2], %7 {strides = array<i32>} : memref<8x128xf32, #tpu.memory_space<vmem>>, vector<8x128xf32>,
    return
  }
  func.func @transform_0(%arg0: i32) -> (i32, i32) {
    %c0_i32 = arith.constant 0 : i32
    %c0_i32_0 = arith.constant 0 : i32
    return %arg0, %c0_i32 : i32, i32
  }
  func.func @transform_1(%arg0: i32) -> (i32, i32) {
    %c0_i32 = arith.constant 0 : i32
    %c0_i32_0 = arith.constant 0 : i32
    return %arg0, %c0_i32 : i32, i32
  }
}

</mosaic_0001>

<bundles_post_ra>
// kernel: tpu_custom_call.1
= control target key start
LH: loop header
LB: loop body
LE: loop exit
PB: predicated region body
PF: predicated region fallthrough
CT: control target
= control target key end

     0   :  { %6 = vsyncpa [#allocation3], 0  ;;  %s563_s0 = inlined_call_operand.hbm [shape: f32[16,128], index: 0, kind: input, shape index: {}]   ;;  %s564_s1 = inlined_call_operand.hbm [shape: f32[16,128], index: 1, kind: output, shape index: {}]  }
   0x1   :  { %8 = vsyncpa [#allocation3 + $0x1], 0 }
   0x2   :  { %9 = vsyncpa [#allocation4], 0 }
   0x3   :  { %11 = vsyncpa [#allocation4 + $0x1], 0  ;;  %s402_s6 = smov 0   ;;  %s404_s7 = smov 0  }
   0x4   :  { %s406_s8 = smov 0   ;;  %s408_s9 = smov 0  }
   0x5 LB: > { %s423_s10 = sadd.s32 4294967295, %s388_s9   ;;  %s230_s11 = sadd.s32 4294967294, %s388_s9   ;;  %s388_s9 = sphi %s408_s9, %s579_s9   ;;  %s384_s8 = sphi %s406_s8, %s578_s8   ;;  %s380_s7 = sphi %s404_s7, %s577_s7   ;;  %s376_s6 = sphi %s402_s6, %s576_s6  }
   0x6   : > { %s427_s12 = sadd.s32 1, %s388_s9   ;;  %s24_s13 = sadd.s32 1, %s384_s8 }
   0x7   : > { %s21_s14 = ssub.s32 %s388_s9, %s427_s12  ;;  %p31_p0 = scmp.ne.s32.totalorder %s384_s8, %s380_s7 }
   0x8   : > { %p22_p1 = scmp.eq.s32.totalorder %s21_s14, 0  ;;  %p32_p2 = scmp.eq.s32.totalorder %s388_s9, 0 }
   0x9   : > { %p37_p3 = scmp.ne.s32.totalorder %s380_s7, %s376_s6  ;;  %p38_p4 = scmp.eq.s32.totalorder %s423_s10, 0 }
   0xa   : > { %s439_s15 = scalar_select %p22_p1, %s384_s8, %s24_s13  }
   0xb   : > { %p441_p5 = por %p32_p2, %p31_p0  ;;  %p445_p6 = por %p38_p4, %p37_p3 }
   0xc   : > { %p61_p7 = scmp.eq.s32.totalorder %s423_s10, 1  ;;  %p67_p8 = scmp.eq.s32.totalorder %s230_s11, 1 }
   0xd   : > { %p254_p10 = scmp.lt.s32.totalorder %s388_s9, 2  ;;  %s87_s20 = sand.u32 1, %s384_s8  }
   0xe   : > { %p452_p11 = por %p61_p7, %p31_p0  ;;  %p456_p12 = por %p67_p8, %p37_p3 }
   0xf   : > { %s234_s21 = sshll.u32 %s388_s9, 7  ;;  %s233_s22 = sshll.u32 %s87_s20, 3 }
  0x10   : > { %s568_s18 = scalar_select %p452_p11, 1, 0 }
  0x11   : > { %s569_s19 = scalar_select %p456_p12, 1, 0 }
  0x12   : > { %s465_s25 = scalar_lea.hbm %s563_s0, %s234_s21  ;;  %s91_s26 = scalar_lea.vmem [#allocation2], %s233_s22 }
  0x13   : > { %s98_s27 = sshll.u32 %s91_s26, 4  ;;  %p469_p13 = pnand %p254_p10, %p441_p5  ;;  %s473_s27 = int_to_ptr.vmem [resolvable:$true] %s98_s27 }
  0x14   : > { %s88_s29 = scalar_lea.sflag [#allocation3], %s87_s20  ;;  %s292_s30 = scalar_lea.hbm %s465_s25, 128 }
  0x15   : > { %p293_p2 = scmp.ne.s32.totalorder %s465_s25, %s292_s30  ;;  %p294_p3 = pneg %p469_p13 }
  0x16   : > { %s297_s4 = scalar_lea.hbm %s563_s0, 256  ;;  %p298_p5 = scmp.lt.u32.totalorder %s465_s25, %s563_s0 }
  0x17   : > { %p295_p4 = pnand %p294_p3, %p293_p2  ;;  %p299_p8 = scmp.lt.u32.totalorder %s297_s4, %s292_s30 }
  0x18   : > { %p301_p9 = scmp.lt.u32.totalorder %s292_s30, %s465_s25 }
  0x19   : > { %p296_p7 = pneg %p295_p4  ;;  %p300_p10 = por %p299_p8, %p298_p5 }
  0x1b   : > { %p302_p0 = por %p301_p9, %p300_p10 }
  0x1d   : > { %p303_p1 = pnand %p302_p0, %p296_p7 }
  0x1f   : > { %306 = shalt.err (!%p303_p1)
}
  0x20   : > { %s307_s13 = scalar_lea.vmem %s473_s27, 128  ;;  %s390_s14 = smov [#allocation2]  }
  0x21   : > { %p308_p2 = scmp.ne.s32.totalorder %s473_s27, %s307_s13  ;;  %s312_s16 = sshll.u32 %s390_s14, 4  ;;  %s313_s16 = int_to_ptr.vmem [resolvable:$false] %s312_s16 }
  0x22   : > { %s314_s20 = scalar_lea.vmem %s313_s16, 256  ;;  %p315_p11 = scmp.lt.s32.totalorder %s473_s27, %s313_s16 }
  0x23   : > { %p310_p4 = pnand %p308_p2, %p294_p3  ;;  %p316_p5 = scmp.lt.s32.totalorder %s314_s20, %s307_s13 }
  0x25   : > { %p311_p12 = pneg %p310_p4  ;;  %p317_p8 = por %p316_p5, %p315_p11 }
  0x27   : > { %p318_p9 = pnand %p317_p8, %p311_p12 }
  0x29   : > { %321 = shalt.err (!%p318_p9)
}
  0x2a   : > { %249 = dma.hbm_to_vmem [thread:$0]  (!%p469_p13), %s465_s25, 128, %s473_s27, %s88_s29  }
  0x2b   : > { %p571_p0 = scmp.lt.s32.totalorder %s388_s9, 3  ;;  %p572_p1 = scmp.ge.s32.totalorder %s388_s9, 1 }
  0x2d   : > { %p104_p3 = pnand %p572_p1, %p571_p0 }
  0x2e   : > { %s507_s21 = sand.u32 (!%p104_p3), 1, %s380_s7  }
  0x2f   : > { %107 = sbr.rel (%p104_p3) target bundleno = 104 (0x68), region = 24  ;;  %s236_s22 = sshll.u32 (!%p104_p3), %s507_s21, 3 }
  0x30   : > { %s110_s23 = scalar_lea.sflag (!%p104_p3), [#allocation3], %s507_s21  ;;  %s113_s24 = scalar_lea.vmem (!%p104_p3), [#allocation2], %s236_s22 }
  0x36   : > { %367 = dma.done.wait (%p445_p6), %s110_s23, 128  }
  0x37   : > { %369 = vsyncadd (%p445_p6), %s110_s23, 4294967168  ;;  %v132_v0 = vld [vmem:[%s113_s24] sm:$0xff]  ;;  %s131_s25 = scalar_lea.vmem [#allocation5], %s236_s22  ;;  %s239_s17 = sshll.u32 %s423_s10, 7 }
  0x38   : > { %v133_v1 = vmul.f32 %v132_v0, %v132_v0  ;;  %s160_s26 = sshll.u32 %s131_s25, 4  ;;  %s521_s29 = scalar_lea.hbm %s564_s1, %s239_s17  ;;  %s516_s26 = int_to_ptr.vmem [resolvable:$true] %s160_s26 }
  0x39   : > { %s147_s30 = scalar_lea.sflag [#allocation4], %s507_s21  ;;  %s322_s2 = scalar_lea.vmem %s516_s26, 128 }
  0x3a   : > { %v134_v2 = vadd.f32 1.0, %v133_v1  ;;  %p323_p6 = scmp.ne.s32.totalorder %s516_s26, %s322_s2  ;;  %p573_p11 = scmp.ne.s32.totalorder %s568_s18, 0 }
  0x3b   : > { %s391_s10 = smov [#allocation5]  }
  0x3c   : > { %288 = vrsqrt.f32 %v134_v2  ;;  %p324_p12 = pnand %p323_p6, %p573_p11  ;;  %s326_s3 = sshll.u32 %s391_s10, 4  ;;  %s327_s3 = int_to_ptr.vmem [resolvable:$false] %s326_s3 }
  0x3d   : > { %s328_s4 = scalar_lea.vmem %s327_s3, 256  ;;  %p329_p7 = scmp.lt.s32.totalorder %s516_s26, %s327_s3 }
  0x3e   : > { %p325_p13 = pneg %p324_p12  ;;  %p330_p10 = scmp.lt.s32.totalorder %s328_s4, %s322_s2 }
  0x40   : > { %p331_p2 = por %p330_p10, %p329_p7 }
  0x42   : > { %p332_p4 = pnand %p331_p2, %p325_p13 }
  0x46   : > { %v289_v3 = vpop.eup %288 }
  0x47   : > { %290 = vrsqrt.f32 %v289_v3  ;;  %vm138_vm0 = vcmp.eq.f32.partialorder %v289_v3, inf  ;;  %v141_v5 = vand.u32 2147483648, %v289_v3  ;;  %vm140_vm1 = vcmp.eq.f32.partialorder %v289_v3, 0.0 }
  0x51   : > { %v291_v4 = vpop.eup %290 }
  0x52   : > { %v137_v6 = vmul.f32 %v291_v4, %v289_v3 }
  0x54   : > { %v139_v7 = vsel %vm138_vm0, %v289_v3, %v137_v6 }
  0x55   : > { %v142_v8 = vsel %vm140_vm1, %v141_v5, %v139_v7 }
  0x56   : > { %v143_v9 = vmul.f32 %v289_v3, %v142_v8 }
  0x58   : > { %v144_v10 = vmul.f32 %v143_v9, %v132_v0 }
  0x5a   : > { %145 = vst [vmem:[%s131_s25] sm:$0xff] %v144_v10 }
  0x5b   : > { %335 = shalt.err (!%p332_p4)
}
  0x5c   : > { %s336_s5 = scalar_lea.hbm %s521_s29, 128  ;;  %s340_s14 = scalar_lea.hbm %s564_s1, 256 }
  0x5d   : > { %p337_p5 = scmp.ne.s32.totalorder %s521_s29, %s336_s5  ;;  %p341_p0 = scmp.lt.u32.totalorder %s521_s29, %s564_s1 }
  0x5e   : > { %p342_p1 = scmp.lt.u32.totalorder %s340_s14, %s336_s5  ;;  %p344_p6 = scmp.lt.u32.totalorder %s336_s5, %s521_s29 }
  0x5f   : > { %p338_p8 = pnand %p337_p5, %p573_p11 }
  0x60   : > { %p343_p3 = por %p342_p1, %p341_p0 }
  0x61   : > { %p339_p9 = pneg %p338_p8 }
  0x62   : > { %p345_p12 = por %p344_p6, %p343_p3 }
  0x64   : > { %p346_p13 = pnand %p345_p12, %p339_p9 }
  0x66   : > { %349 = shalt.err (!%p346_p13)
}
  0x67   : > { %244 = dma.vmem_to_hbm [thread:$0]  (%p573_p11), %s516_s26, 128, %s521_s29, %s147_s30  }
  0x68 PF: > { %s172_s21 = sand.u32 1, %s376_s6   ;;  %p574_p7 = scmp.ne.s32.totalorder %s569_s19, 0 }
  0x69   : > { %p575_p10 = scmp.ge.s32.totalorder %s388_s9, 2  ;;  %s173_s22 = scalar_lea.sflag [#allocation4], %s172_s21 }
  0x6b   : > { %p251_p2 = pnand %p575_p10, %p574_p7 }
  0x6d   : > { %371 = dma.done.wait (!%p251_p2), %s173_s22, 128  }
  0x6e   : > { %373 = vsyncadd (!%p251_p2), %s173_s22, 4294967168  ;;  %p14_p4 = scmp.ge.s32.totalorder %s427_s12, 4   ;;  %s576_s6 = smov %s380_s7 }
  0x6f   : > { %s577_s7 = smov %s384_s8  ;;  %s578_s8 = smov %s439_s15 }
  0x70   : > { %s579_s9 = smov %s427_s12  ;;  %16 = sbr.rel (!%p14_p4) target bundleno = 5 (0x5), region = 69 }
  0x77   :  { %178 = vsyncpa [#allocation3], 1 }
  0x78   :  { %180 = vsyncpa [#allocation3 + $0x1], 1 }
  0x79   :  { %181 = vsyncpa [#allocation4], 1 }
  0x7a   :  { %183 = vsyncpa [#allocation4 + $0x1], 1 }

</bundles_post_ra>
